<compile_context>
chip_gen: v7x
topology: tpu7x:2x2x1
jax: 0.10.0
libtpu: 0.0.40
codegen_flags: <defaults>
</compile_context>

<pallas_src>
import math

import jax
import jax.numpy as jnp
from jax import lax
from jax.experimental import pallas as pl
from jax.experimental.pallas import tpu as pltpu

FEAT_DIM  = 32
CLASS_NUM = 16
N_SPLITS  = 2
SPLIT_DIM = FEAT_DIM // N_SPLITS
TEMP      = 5.0
EPS       = 1e-5                                   # torch: x / (||x||_2 + 1e-5)
LOG_SIGMOID_ONE = float(-math.log1p(math.exp(-1.0)))   # log(sigmoid(1.0))

_VMEM = pl.BlockSpec(memory_space=pltpu.MemorySpace.VMEM)


# ------------------------------------------------------------ kernel helpers

def _l2n_rows(x):
    # torch normalize: x / (||x||_2 + 1e-5) along the feature (lane) axis.
    n = jnp.sqrt(jnp.sum(x * x, axis=1, keepdims=True))
    return x * pl.reciprocal(n + EPS, approx=True)


def _split_l2n(x):
    # L2-normalize each SPLIT_DIM-wide block of columns independently, without
    # sub-vreg lane slicing: masked lane reductions keep the (N, FEAT_DIM)
    # layout intact and the result is one lane-dense slab.
    col = lax.broadcasted_iota(jnp.int32, x.shape, 1)
    sq = x * x
    inv = jnp.zeros_like(x)
    for i in range(N_SPLITS):                      # unrolled at trace time
        mask = (col >= i * SPLIT_DIM) & (col < (i + 1) * SPLIT_DIM)
        s = jnp.sum(jnp.where(mask, sq, 0.0), axis=1, keepdims=True)
        inv = jnp.where(mask, pl.reciprocal(jnp.sqrt(s) + EPS, approx=True), inv)
    return x * inv


def _softmax_rows(logits):
    m = jnp.max(logits, axis=1, keepdims=True)
    e = jnp.exp(logits - m)
    return e * pl.reciprocal(jnp.sum(e, axis=1, keepdims=True), approx=True)


def _log_sigmoid(x):
    # Stable log(sigmoid(x)) = min(x, 0) - log(1 + exp(-|x|)).
    return jnp.minimum(x, 0.0) - jnp.log(1.0 + jnp.exp(-jnp.abs(x)))


def _embed_body(x_flat, w_pool, b):
    # Global average pool folded into the contraction (K = C*H*W).
    feat = jnp.dot(x_flat, w_pool, preferred_element_type=jnp.float32) + b
    return jnp.maximum(feat, 0.0)                  # ReLU


def _features_body(feat, w_lin, b_lin, pf):
    # calc_pd: softmax(linear(feat))
    pd = _softmax_rows(jnp.dot(feat, w_lin, preferred_element_type=jnp.float32)
                       + b_lin)
    # d_feature == 'ed': pd @ pretrain_features, then per-split l2n (normalize_ed)
    ed = jnp.dot(pd, pf, preferred_element_type=jnp.float32)
    # preprocess_before_split == 'l2n', preprocess_after_split == 'l2n'
    fp = _l2n_rows(feat)
    return _split_l2n(fp), _split_l2n(ed)


# ------------------------------------------------------------------- kernels

def _embed_kernel(x_ref, w_ref, b_ref, o_ref):
    o_ref[...] = _embed_body(x_ref[...], w_ref[...], b_ref[...])


def _classify_feat_kernel(f_ref, w_ref, b_ref, o_ref):
    o_ref[...] = _softmax_rows(
        jnp.dot(f_ref[...], w_ref[...], preferred_element_type=jnp.float32)
        + b_ref[...])


def _embed_classify_kernel(x_ref, wp_ref, be_ref, wl_ref, bl_ref, o_ref):
    feat = _embed_body(x_ref[...], wp_ref[...], be_ref[...])
    o_ref[...] = _softmax_rows(
        jnp.dot(feat, wl_ref[...], preferred_element_type=jnp.float32)
        + bl_ref[...])


def _features_from_emb_kernel(f_ref, wl_ref, bl_ref, pf_ref, split_ref, d_ref):
    split, d = _features_body(f_ref[...], wl_ref[...], bl_ref[...], pf_ref[...])
    split_ref[...] = split
    d_ref[...] = d


def _fusing_kernel(x_ref, wp_ref, be_ref, wl_ref, bl_ref, pf_ref,
                   split_ref, d_ref):
    # Entire pipeline for the stacked support++query rows in one kernel.
    feat = _embed_body(x_ref[...], wp_ref[...], be_ref[...])
    split, d = _features_body(feat, wl_ref[...], bl_ref[...], pf_ref[...])
    split_ref[...] = split
    d_ref[...] = d


def _fuse_proba_kernel(p1_ref, p2_ref, o_ref):
    # logit_fusion == 'product': log(sigmoid(p1)*sigmoid(p2)) computed stably.
    o_ref[...] = _log_sigmoid(p1_ref[...]) + _log_sigmoid(p2_ref[...])


def _process_score_kernel(a_ref, b_ref, o1_ref, o2_ref):
    # single=False, use_x_only=False:
    #   o1 = fuse_proba(a, b) * temp
    #   o2 = fuse_proba(ones, b) * temp = (log_sigmoid(1) + log_sigmoid(b)) * temp
    lsb = _log_sigmoid(b_ref[...])
    o1_ref[...] = (_log_sigmoid(a_ref[...]) + lsb) * TEMP
    o2_ref[...] = (LOG_SIGMOID_ONE + lsb) * TEMP


# ------------------------------------------------------------------- wrapper

class IFSLUtilsPallas:
    """JAX/Pallas re-implementation of IFSLUtils (synthetic embed_func)."""

    def __init__(self, key, c_in=4):
        k1, k2, k3, k4 = jax.random.split(key, 4)
        self.c_in = c_in
        # embed_func: global-avg-pool -> linear(c_in, feat_dim) -> ReLU
        self.w_embed = jax.random.normal(k1, (c_in, FEAT_DIM), jnp.float32) * 0.1
        self.b_embed = jnp.zeros((1, FEAT_DIM), jnp.float32)
        # nn.Linear(feat_dim, class_num); stored transposed: (feat_dim, class_num)
        self.w_lin_t = jax.random.normal(k2, (FEAT_DIM, CLASS_NUM), jnp.float32) \
            * (1.0 / jnp.sqrt(jnp.float32(FEAT_DIM)))
        self.b_lin = jax.random.normal(k3, (1, CLASS_NUM), jnp.float32) * 0.01
        # TODO(synk): reference loads pretrain features via np.load(feature_path);
        # synthesized deterministically here instead.
        self.features = jax.random.normal(k4, (CLASS_NUM, FEAT_DIM), jnp.float32)
        self.mean_features = self.features.mean(axis=0)
        self._w_pool_cache = {}                    # keyed by H*W

    # -- parameter / layout helpers ------------------------------------------

    def _pooled_weight(self, hw):
        # w_pool[c*HW + s, f] = w_embed[c, f] / HW : folds the global average
        # pool into the embed matmul (exact; built once per spatial size).
        if hw not in self._w_pool_cache:
            self._w_pool_cache[hw] = jnp.repeat(self.w_embed, hw, axis=0) / float(hw)
        return self._w_pool_cache[hw]

    @staticmethod
    def _flatten(x):
        return x.reshape(x.shape[0], -1).astype(jnp.float32)

    @staticmethod
    def _to_splits(a):
        # (N, FEAT_DIM) lane-dense slab -> (N_SPLITS, N, SPLIT_DIM): pure
        # wrapper-side layout plumbing.
        n = a.shape[0]
        return jnp.transpose(a.reshape(n, N_SPLITS, SPLIT_DIM), (1, 0, 2))

    # -- forward / embed -----------------------------------------------------

    def __call__(self, x):                         # forward(x) == embed_func(x)
        return self.embed(x)

    def embed(self, x):
        xf = self._flatten(x)
        B, K = xf.shape
        w_pool = self._pooled_weight(K // self.c_in)
        TILE_B = 256
        if B % TILE_B == 0 and B > TILE_B:
            # Large-batch path: tile the batch so VMEM stays bounded (v7x:
            # 64 MiB) and the grid axis can be split across TensorCores.
            return pl.pallas_call(
                _embed_kernel,
                out_shape=jax.ShapeDtypeStruct((B, FEAT_DIM), jnp.float32),
                grid=(B // TILE_B,),
                in_specs=[pl.BlockSpec((TILE_B, K), lambda i: (i, 0)),
                          pl.BlockSpec((K, FEAT_DIM), lambda i: (0, 0)),
                          pl.BlockSpec((1, FEAT_DIM), lambda i: (0, 0))],
                out_specs=pl.BlockSpec((TILE_B, FEAT_DIM), lambda i: (i, 0)),
                compiler_params=pltpu.CompilerParams(
                    dimension_semantics=("parallel",)),
            )(xf, w_pool, self.b_embed)
        return pl.pallas_call(
            _embed_kernel,
            out_shape=jax.ShapeDtypeStruct((B, FEAT_DIM), jnp.float32),
            in_specs=[_VMEM] * 3,
            out_specs=_VMEM,
        )(xf, w_pool, self.b_embed)

    # -- classify ------------------------------------------------------------

    def classify(self, x, is_feature=False):
        if is_feature:
            feat = x.astype(jnp.float32)
            return pl.pallas_call(
                _classify_feat_kernel,
                out_shape=jax.ShapeDtypeStruct((feat.shape[0], CLASS_NUM),
                                               jnp.float32),
                in_specs=[_VMEM] * 3,
                out_specs=_VMEM,
            )(feat, self.w_lin_t, self.b_lin)
        # embed + linear + softmax fused into one kernel (no HBM round-trip of
        # the embedded features).
        xf = self._flatten(x)
        w_pool = self._pooled_weight(xf.shape[1] // self.c_in)
        return pl.pallas_call(
            _embed_classify_kernel,
            out_shape=jax.ShapeDtypeStruct((xf.shape[0], CLASS_NUM), jnp.float32),
            in_specs=[_VMEM] * 5,
            out_specs=_VMEM,
        )(xf, w_pool, self.b_embed, self.w_lin_t, self.b_lin)

    # -- feature splitting ---------------------------------------------------

    def get_features(self, support_emb, query_emb):
        # Single kernel on the stacked rows instead of one call per set.
        ns = support_emb.shape[0]
        feat = jnp.concatenate([support_emb, query_emb], axis=0).astype(jnp.float32)
        n = feat.shape[0]
        split_all, d_all = pl.pallas_call(
            _features_from_emb_kernel,
            out_shape=(jax.ShapeDtypeStruct((n, FEAT_DIM), jnp.float32),
                       jax.ShapeDtypeStruct((n, FEAT_DIM), jnp.float32)),
            in_specs=[_VMEM] * 4,
            out_specs=(_VMEM, _VMEM),
        )(feat, self.w_lin_t, self.b_lin, self.features)
        return (self._to_splits(split_all[:ns]), self._to_splits(d_all[:ns]),
                self._to_splits(split_all[ns:]), self._to_splits(d_all[ns:]))

    def fusing(self, support, query):
        # Whole pipeline (embed both sets + classify + ed + split/l2n) in ONE
        # pallas_call on the stacked support++query rows.
        ns = support.shape[0]
        x_all = jnp.concatenate([self._flatten(support), self._flatten(query)],
                                axis=0)
        n, k = x_all.shape
        w_pool = self._pooled_weight(k // self.c_in)
        split_all, d_all = pl.pallas_call(
            _fusing_kernel,
            out_shape=(jax.ShapeDtypeStruct((n, FEAT_DIM), jnp.float32),
                       jax.ShapeDtypeStruct((n, FEAT_DIM), jnp.float32)),
            in_specs=[_VMEM] * 6,
            out_specs=(_VMEM, _VMEM),
        )(x_all, w_pool, self.b_embed, self.w_lin_t, self.b_lin, self.features)
        # single=False -> (split_support, support_d, split_query, query_d)
        return (self._to_splits(split_all[:ns]), self._to_splits(d_all[:ns]),
                self._to_splits(split_all[ns:]), self._to_splits(d_all[ns:]))

    # -- fusion / scoring ----------------------------------------------------

    def fuse_features(self, x1, x2):               # fusion == 'concat'
        return jnp.concatenate((x1, x2), axis=2)

    def fuse_proba(self, p1, p2):                  # logit_fusion == 'product'
        return pl.pallas_call(
            _fuse_proba_kernel,
            out_shape=jax.ShapeDtypeStruct(p1.shape, jnp.float32),
            in_specs=[_VMEM, _VMEM],
            out_specs=_VMEM,
        )(p1.astype(jnp.float32), p2.astype(jnp.float32))

    def process_score(self, a, b):                 # single=False, use_x_only=False
        a = a.astype(jnp.float32)
        b = b.astype(jnp.float32)
        return pl.pallas_call(
            _process_score_kernel,
            out_shape=(jax.ShapeDtypeStruct(a.shape, jnp.float32),
                       jax.ShapeDtypeStruct(a.shape, jnp.float32)),
            in_specs=[_VMEM, _VMEM],
            out_specs=(_VMEM, _VMEM),
        )(a, b)


# ----------------------------------------------------------------------- main

if __name__ == "__main__":
    key = jax.random.PRNGKey(0)
    kp, kx, ks, kq = jax.random.split(key, 4)
    model = IFSLUtilsPallas(kp, c_in=4)

    x       = jax.random.normal(kx, (2, 4, 16, 16), jnp.float32)   # NCHW
    support = jax.random.normal(ks, (4, 4, 16, 16), jnp.float32)
    query   = jax.random.normal(kq, (2, 4, 16, 16), jnp.float32)

    out   = model(x)                               # forward pass (embed)
    probs = model.classify(x)                      # fused embed + softmax(linear)
    ss, sd, qs, qd = model.fusing(support, query)  # fully fused feature path
    fused_q = model.fuse_features(qs, qd)          # concat fusion
    s1, s2  = model.process_score(probs, probs * 0.5)

    for t in (out, probs, ss, sd, qs, qd, fused_q, s1, s2):
        jax.block_until_ready(t)
    print("KERNEL_OK")
</pallas_src>

<mosaic_0001>
module attributes {stable_mosaic.version = 11 : i64} {
  func.func @_embed_kernel(%arg0: memref<2x1024xf32, #tpu.memory_space<vmem>>, %arg1: memref<1024x32xf32, #tpu.memory_space<vmem>>, %arg2: memref<1x32xf32, #tpu.memory_space<vmem>>, %arg3: memref<2x32xf32, #tpu.memory_space<vmem>>) attributes {dimension_semantics = [], scalar_prefetch = 0 : i64, scratch_operands = 0 : i64, tpu.core_type = #tpu.core_type<tc>} {
    %c0 = arith.constant 0 : index
    %c0_0 = arith.constant 0 : index
    %0 = vector.load %arg0[%c0, %c0_0] : memref<2x1024xf32, #tpu.memory_space<vmem>>, vector<2x1024xf32>
    %c0_1 = arith.constant 0 : index
    %c0_2 = arith.constant 0 : index
    %1 = vector.load %arg1[%c0_1, %c0_2] : memref<1024x32xf32, #tpu.memory_space<vmem>>, vector<1024x32xf32>
    %c0_3 = arith.constant 0 : index
    %c0_4 = arith.constant 0 : index
    %2 = vector.load %arg2[%c0_3, %c0_4] : memref<1x32xf32, #tpu.memory_space<vmem>>, vector<1x32xf32>
    %cst = arith.constant dense<0.000000e+00> : vector<2x32xf32>
    %3 = tpu.matmul %0, %1, %cst {dimension_numbers = #tpu.dot_dimension_numbers<[1], [0], [0], [1], [0, 0, 1, 1], [], []>} : vector<2x1024xf32>, vector<1024x32xf32>, vector<2x32xf32> -> vector<2x32xf32>
    %4 = vector.broadcast %2 : vector<1x32xf32> to vector<2x32xf32>
    %5 = arith.addf %3, %4 : vector<2x32xf32>
    %cst_5 = arith.constant 0.000000e+00 : f32
    %6 = vector.broadcast %cst_5 : f32 to vector<2x32xf32>
    %7 = arith.maximumf %5, %6 : vector<2x32xf32>
    %c0_6 = arith.constant 0 : index
    %c0_7 = arith.constant 0 : index
    %8 = vector.load %arg3[%c0_6, %c0_7] : memref<2x32xf32, #tpu.memory_space<vmem>>, vector<2x32xf32>
    tpu.vector_store %arg3[%c0_6, %c0_7], %7 {strides = array<i32>} : memref<2x32xf32, #tpu.memory_space<vmem>>, vector<2x32xf32>,
    return
  }
}

</mosaic_0001>

<bundles_post_ra>
// kernel: tpu_custom_call.1
= control target key start
LH: loop header
LB: loop body
LE: loop exit
PB: predicated region body
PF: predicated region fallthrough
CT: control target
= control target key end

     0   :  { %v790_v47 = vmov 1983009808   ;;  %v158_v49 = vlaneseq  ;;  %s1228_s0 = inlined_call_operand.vmem [shape: f32[2,1024], index: 0, kind: input, shape index: {}]   ;;  %s1229_s1 = inlined_call_operand.vmem [shape: f32[1024,32], index: 1, kind: input, shape index: {}]   ;;  %s1230_s2 = inlined_call_operand.vmem [shape: f32[1,32], index: 2, kind: input, shape index: {}]   ;;  %s1231_s3 = inlined_call_operand.hbm [shape: f32[2,32], index: 3, kind: output, shape index: {}]  }
   0x1   :  { %v33_v0 = vld [vmem:[%s1229_s1 + $0x80] sm:$0xff]  ;;  %v34_v1 = vld [vmem:[%s1229_s1 + $0x88] sm:$0xff]  ;;  %v35_v11 = vld [vmem:[%s1229_s1 + $0x90] sm:$0xff]  ;;  %v156_v48 = vunpack.c.l.s4 %v790_v47 }
   0x2   :  { %v17_v2 = vld [vmem:[%s1229_s1] sm:$0xff]  ;;  %v634_v3 = vpack.c.bf16 %v34_v1, %v33_v0  ;;  %v18_v4 = vld [vmem:[%s1229_s1 + $0x8] sm:$0xff]  ;;  %v36_v13 = vld [vmem:[%s1229_s1 + $0x98] sm:$0xff]  ;;  %v159_v0 = vshrl.u32 %v158_v49, 7 }
   0x3   :  { %v65_v5 = vld [vmem:[%s1229_s1 + $0x180] sm:$0xff]  ;;  %v66_v6 = vld [vmem:[%s1229_s1 + $0x188] sm:$0xff]  ;;  %v636_v7 = vpack.c.bf16 %v18_v4, %v17_v2  ;;  %v19_v14 = vld [vmem:[%s1229_s1 + $0x10] sm:$0xff]  ;;  %v638_v16 = vpack.c.bf16 %v36_v13, %v35_v11  ;;  %v157_v63 = vunpack.c.0.s8 %v156_v48 }
   0x4   :  { %v666_v8 = vpack.c.bf16 %v66_v6, %v65_v5  ;;  %v49_v9 = vld [vmem:[%s1229_s1 + $0x100] sm:$0xff]  ;;  %v50_v10 = vld [vmem:[%s1229_s1 + $0x108] sm:$0xff]  ;;  %635 = vmatprep.subr.bf16.mxu0 %v634_v3  ;;  %v20_v15 = vld [vmem:[%s1229_s1 + $0x18] sm:$0xff] }
   0x5   :  { %v668_v12 = vpack.c.bf16 %v50_v10, %v49_v9  ;;  %637 = vmatpush3.bf16.msra.mxu0 %v636_v7  ;;  %v640_v17 = vpack.c.bf16 %v20_v15, %v19_v14  ;;  %v67_v18 = vld [vmem:[%s1229_s1 + $0x190] sm:$0xff]  ;;  %v68_v19 = vld [vmem:[%s1229_s1 + $0x198] sm:$0xff]  ;;  %v37_v23 = vld [vmem:[%s1229_s1 + $0xa0] sm:$0xff]  ;;  %v962_v13 = vsub.s32 %v157_v63, %v159_v0 }
   0x6   :  { %667 = vmatprep.subr.bf16.mxu1 %v666_v8  ;;  %v51_v20 = vld [vmem:[%s1229_s1 + $0x110] sm:$0xff]  ;;  %v670_v21 = vpack.c.bf16 %v68_v19, %v67_v18  ;;  %v52_v22 = vld [vmem:[%s1229_s1 + $0x118] sm:$0xff]  ;;  %v38_v24 = vld [vmem:[%s1229_s1 + $0xa8] sm:$0xff]  ;;  %639 = vmatprep.subr.bf16.mxu0 %v638_v16 }
   0x7   :  { %669 = vmatpush3.bf16.msra.mxu1 %v668_v12  ;;  %v672_v25 = vpack.c.bf16 %v52_v22, %v51_v20  ;;  %v642_v26 = vpack.c.bf16 %v38_v24, %v37_v23  ;;  %v21_v27 = vld [vmem:[%s1229_s1 + $0x20] sm:$0xff]  ;;  %v22_v28 = vld [vmem:[%s1229_s1 + $0x28] sm:$0xff]  ;;  %v39_v35 = vld [vmem:[%s1229_s1 + $0xb0] sm:$0xff] }
   0x8   :  { %v69_v29 = vld [vmem:[%s1229_s1 + $0x1a0] sm:$0xff]  ;;  %671 = vmatprep.subr.bf16.mxu1 %v670_v21  ;;  %v70_v30 = vld [vmem:[%s1229_s1 + $0x1a8] sm:$0xff]  ;;  %v644_v33 = vpack.c.bf16 %v22_v28, %v21_v27  ;;  %v40_v36 = vld [vmem:[%s1229_s1 + $0xb8] sm:$0xff] }
   0x9   :  { %v53_v31 = vld [vmem:[%s1229_s1 + $0x120] sm:$0xff]  ;;  %v54_v32 = vld [vmem:[%s1229_s1 + $0x128] sm:$0xff]  ;;  %641 = vmatpush3.bf16.msra.mxu0 %v640_v17  ;;  %v674_v34 = vpack.c.bf16 %v70_v30, %v69_v29  ;;  %v23_v37 = vld [vmem:[%s1229_s1 + $0x30] sm:$0xff]  ;;  %v646_v39 = vpack.c.bf16 %v40_v36, %v39_v35 }
   0xa   :  { %643 = vmatprep.subr.bf16.mxu0 %v642_v26  ;;  %v676_v38 = vpack.c.bf16 %v54_v32, %v53_v31  ;;  %v24_v40 = vld [vmem:[%s1229_s1 + $0x38] sm:$0xff]  ;;  %v71_v41 = vld [vmem:[%s1229_s1 + $0x1b0] sm:$0xff]  ;;  %v41_v46 = vld [vmem:[%s1229_s1 + $0xc0] sm:$0xff] }
   0xb   :  { %673 = vmatpush3.bf16.msra.mxu1 %v672_v25  ;;  %v72_v42 = vld [vmem:[%s1229_s1 + $0x1b8] sm:$0xff]  ;;  %v55_v44 = vld [vmem:[%s1229_s1 + $0x130] sm:$0xff]  ;;  %v42_v50 = vld [vmem:[%s1229_s1 + $0xc8] sm:$0xff]  ;;  %v648_v51 = vpack.c.bf16 %v24_v40, %v23_v37 }
   0xc   :  { %675 = vmatprep.subr.bf16.mxu1 %v674_v34  ;;  %v678_v43 = vpack.c.bf16 %v72_v42, %v71_v41  ;;  %v56_v45 = vld [vmem:[%s1229_s1 + $0x138] sm:$0xff]  ;;  %v73_v52 = vld [vmem:[%s1229_s1 + $0x1c0] sm:$0xff]  ;;  %v74_v53 = vld [vmem:[%s1229_s1 + $0x1c8] sm:$0xff]  ;;  %v650_v55 = vpack.c.bf16 %v42_v50, %v41_v46 }
   0xd   :  { %645 = vmatpush3.bf16.msra.mxu0 %v644_v33  ;;  %v680_v54 = vpack.c.bf16 %v56_v45, %v55_v44  ;;  %v25_v56 = vld [vmem:[%s1229_s1 + $0x40] sm:$0xff]  ;;  %v26_v57 = vld [vmem:[%s1229_s1 + $0x48] sm:$0xff]  ;;  %v682_v59 = vpack.c.bf16 %v74_v53, %v73_v52  ;;  %v43_v61 = vld [vmem:[%s1229_s1 + $0xd0] sm:$0xff] }
   0xe   :  { %647 = vmatprep.subr.bf16.mxu0 %v646_v39  ;;  %v57_v58 = vld [vmem:[%s1229_s1 + $0x140] sm:$0xff]  ;;  %v58_v60 = vld [vmem:[%s1229_s1 + $0x148] sm:$0xff]  ;;  %v44_v62 = vld [vmem:[%s1229_s1 + $0xd8] sm:$0xff]  ;;  %v652_v3 = vpack.c.bf16 %v26_v57, %v25_v56 }
   0xf   :  { %677 = vmatpush3.bf16.msra.mxu1 %v676_v38  ;;  %v75_v1 = vld [vmem:[%s1229_s1 + $0x1d0] sm:$0xff]  ;;  %v76_v2 = vld [vmem:[%s1229_s1 + $0x1d8] sm:$0xff]  ;;  %v684_v4 = vpack.c.bf16 %v58_v60, %v57_v58  ;;  %v654_v5 = vpack.c.bf16 %v44_v62, %v43_v61  ;;  %v45_v11 = vld [vmem:[%s1229_s1 + $0xe0] sm:$0xff] }
  0x10   :  { %679 = vmatprep.subr.bf16.mxu1 %v678_v43  ;;  %v27_v6 = vld [vmem:[%s1229_s1 + $0x50] sm:$0xff]  ;;  %v28_v7 = vld [vmem:[%s1229_s1 + $0x58] sm:$0xff]  ;;  %v686_v9 = vpack.c.bf16 %v76_v2, %v75_v1  ;;  %v46_v12 = vld [vmem:[%s1229_s1 + $0xe8] sm:$0xff] }
  0x11   :  { %649 = vmatpush3.bf16.msra.mxu0 %v648_v51  ;;  %v59_v8 = vld [vmem:[%s1229_s1 + $0x150] sm:$0xff]  ;;  %v60_v10 = vld [vmem:[%s1229_s1 + $0x158] sm:$0xff]  ;;  %v77_v14 = vld [vmem:[%s1229_s1 + $0x1e0] sm:$0xff]  ;;  %v656_v16 = vpack.c.bf16 %v28_v7, %v27_v6  ;;  %v658_v19 = vpack.c.bf16 %v46_v12, %v45_v11 }
  0x12   :  { %651 = vmatprep.subr.bf16.mxu0 %v650_v55  ;;  %v78_v15 = vld [vmem:[%s1229_s1 + $0x1e8] sm:$0xff]  ;;  %v29_v17 = vld [vmem:[%s1229_s1 + $0x60] sm:$0xff]  ;;  %v688_v18 = vpack.c.bf16 %v60_v10, %v59_v8  ;;  %v47_v25 = vld [vmem:[%s1229_s1 + $0xf0] sm:$0xff] }
  0x13   :  { %681 = vmatpush3.bf16.msra.mxu1 %v680_v54  ;;  %v30_v20 = vld [vmem:[%s1229_s1 + $0x68] sm:$0xff]  ;;  %v61_v21 = vld [vmem:[%s1229_s1 + $0x160] sm:$0xff]  ;;  %v690_v23 = vpack.c.bf16 %v78_v15, %v77_v14  ;;  %v48_v26 = vld [vmem:[%s1229_s1 + $0xf8] sm:$0xff] }
  0x14   :  { %683 = vmatprep.subr.bf16.mxu1 %v682_v59  ;;  %v15_v22 = vld [vmem:[%s1228_s0] sm:$0xff]  ;;  %v62_v24 = vld [vmem:[%s1229_s1 + $0x168] sm:$0xff]  ;;  %v79_v29 = vld [vmem:[%s1229_s1 + $0x1f0] sm:$0xff]  ;;  %v660_v31 = vpack.c.bf16 %v30_v20, %v29_v17  ;;  %v662_v35 = vpack.c.bf16 %v48_v26, %v47_v25 }
  0x15   :  { %653 = vmatpush3.bf16.msra.mxu0 %v652_v3  ;;  %v161_v27 = vrot.slane %v15_v22, %v962_v13  ;;  %v154_v28 = vcombine.high %v15_v22, %v15_v22  ;;  %v80_v30 = vld [vmem:[%s1229_s1 + $0x1f8] sm:$0xff]  ;;  %v692_v34 = vpack.c.bf16 %v62_v24, %v61_v21  ;;  %v31_v36 = vld [vmem:[%s1229_s1 + $0x70] sm:$0xff]  ;;  %v97_v41 = vld [vmem:[%s1229_s1 + $0x280] sm:$0xff] }
  0x16   :  { %655 = vmatprep.subr.bf16.mxu0 %v654_v5  ;;  %v32_v37 = vld [vmem:[%s1229_s1 + $0x78] sm:$0xff]  ;;  %v63_v38 = vld [vmem:[%s1229_s1 + $0x170] sm:$0xff]  ;;  %v694_v39 = vpack.c.bf16 %v80_v30, %v79_v29  ;;  %v98_v42 = vld [vmem:[%s1229_s1 + $0x288] sm:$0xff] }
  0x17   :  { %685 = vmatpush3.bf16.msra.mxu1 %v684_v4  ;;  %v169_v32 = vcombine.high %v161_v27, %v161_v27  ;;  %v168_v33 = vrot.slane %v154_v28, %v962_v13  ;;  %v64_v40 = vld [vmem:[%s1229_s1 + $0x178] sm:$0xff]  ;;  %v129_v44 = vld [vmem:[%s1229_s1 + $0x380] sm:$0xff]  ;;  %v130_v45 = vld [vmem:[%s1229_s1 + $0x388] sm:$0xff]  ;;  %v664_v46 = vpack.c.bf16 %v32_v37, %v31_v36  ;;  %v698_v48 = vpack.c.bf16 %v98_v42, %v97_v41 }
  0x18   :  { %687 = vmatprep.subr.bf16.mxu1 %v686_v9  ;;  %v696_v47 = vpack.c.bf16 %v64_v40, %v63_v38  ;;  %v81_v49 = vld [vmem:[%s1229_s1 + $0x200] sm:$0xff]  ;;  %v82_v50 = vld [vmem:[%s1229_s1 + $0x208] sm:$0xff]  ;;  %v730_v52 = vpack.c.bf16 %v130_v45, %v129_v44  ;;  %v99_v54 = vld [vmem:[%s1229_s1 + $0x290] sm:$0xff] }
  0x19   :  { %657 = vmatpush3.bf16.msra.mxu0 %v656_v16  ;;  %260 = vmatprep.mubr.f32.mxu0 %v169_v32  ;;  %v170_v43 = vcombine.high %v168_v33, %v168_v33  ;;  %v113_v51 = vld [vmem:[%s1229_s1 + $0x300] sm:$0xff]  ;;  %v114_v53 = vld [vmem:[%s1229_s1 + $0x308] sm:$0xff]  ;;  %v100_v55 = vld [vmem:[%s1229_s1 + $0x298] sm:$0xff]  ;;  %v700_v58 = vpack.c.bf16 %v82_v50, %v81_v49 }
  0x1a   :  { %659 = vmatprep.subr.bf16.mxu0 %v658_v19  ;;  %v131_v56 = vld [vmem:[%s1229_s1 + $0x390] sm:$0xff]  ;;  %v132_v57 = vld [vmem:[%s1229_s1 + $0x398] sm:$0xff]  ;;  %v732_v59 = vpack.c.bf16 %v114_v53, %v113_v51  ;;  %v702_v60 = vpack.c.bf16 %v100_v55, %v99_v54  ;;  %v101_v2 = vld [vmem:[%s1229_s1 + $0x2a0] sm:$0xff] }
  0x1b   :  { %689 = vmatpush3.bf16.msra.mxu1 %v688_v18  ;;  %330 = vmatprep.mubr.f32.mxu1 %v170_v43  ;;  %v83_v61 = vld [vmem:[%s1229_s1 + $0x210] sm:$0xff]  ;;  %v84_v62 = vld [vmem:[%s1229_s1 + $0x218] sm:$0xff]  ;;  %v734_v0 = vpack.c.bf16 %v132_v57, %v131_v56  ;;  %v102_v3 = vld [vmem:[%s1229_s1 + $0x2a8] sm:$0xff] }
  0x1c   :  { %691 = vmatprep.subr.bf16.mxu1 %v690_v23  ;;  %v115_v63 = vld [vmem:[%s1229_s1 + $0x310] sm:$0xff]  ;;  %v116_v1 = vld [vmem:[%s1229_s1 + $0x318] sm:$0xff]  ;;  %v133_v4 = vld [vmem:[%s1229_s1 + $0x3a0] sm:$0xff]  ;;  %v704_v6 = vpack.c.bf16 %v84_v62, %v83_v61  ;;  %v706_v8 = vpack.c.bf16 %v102_v3, %v101_v2 }
  0x1d   :  { %661 = vmatpush3.bf16.msra.mxu0 %v660_v31  ;;  %v134_v5 = vld [vmem:[%s1229_s1 + $0x3a8] sm:$0xff]  ;;  %v736_v7 = vpack.c.bf16 %v116_v1, %v115_v63  ;;  %v85_v9 = vld [vmem:[%s1229_s1 + $0x220] sm:$0xff]  ;;  %v103_v15 = vld [vmem:[%s1229_s1 + $0x2b0] sm:$0xff] }
  0x1e   :  { %663 = vmatprep.subr.bf16.mxu0 %v662_v35  ;;  %v86_v10 = vld [vmem:[%s1229_s1 + $0x228] sm:$0xff]  ;;  %v117_v11 = vld [vmem:[%s1229_s1 + $0x320] sm:$0xff]  ;;  %v738_v12 = vpack.c.bf16 %v134_v5, %v133_v4  ;;  %v104_v16 = vld [vmem:[%s1229_s1 + $0x2b8] sm:$0xff] }
  0x1f   :  { %693 = vmatpush3.bf16.msra.mxu1 %v692_v34  ;;  %v118_v14 = vld [vmem:[%s1229_s1 + $0x328] sm:$0xff]  ;;  %v135_v17 = vld [vmem:[%s1229_s1 + $0x3b0] sm:$0xff]  ;;  %v136_v18 = vld [vmem:[%s1229_s1 + $0x3b8] sm:$0xff]  ;;  %v708_v19 = vpack.c.bf16 %v86_v10, %v85_v9  ;;  %v710_v22 = vpack.c.bf16 %v104_v16, %v103_v15 }
  0x20   :  { %695 = vmatprep.subr.bf16.mxu1 %v694_v39  ;;  %v87_v20 = vld [vmem:[%s1229_s1 + $0x230] sm:$0xff]  ;;  %v740_v21 = vpack.c.bf16 %v118_v14, %v117_v11  ;;  %v88_v23 = vld [vmem:[%s1229_s1 + $0x238] sm:$0xff]  ;;  %v742_v26 = vpack.c.bf16 %v136_v18, %v135_v17  ;;  %v106_v28 = vld [vmem:[%s1229_s1 + $0x2c8] sm:$0xff] }
  0x21   :  { %665 = vmatpush3.bf16.msra.mxu0 %v664_v46  ;;  %v119_v24 = vld [vmem:[%s1229_s1 + $0x330] sm:$0xff]  ;;  %v120_v25 = vld [vmem:[%s1229_s1 + $0x338] sm:$0xff]  ;;  %v137_v29 = vld [vmem:[%s1229_s1 + $0x3c0] sm:$0xff] }
  0x22   :  { %699 = vmatprep.subr.bf16.mxu0 %v698_v48  ;;  %v138_v30 = vld [vmem:[%s1229_s1 + $0x3c8] sm:$0xff] }
  0x23   :  { %697 = vmatpush3.bf16.msra.mxu1 %v696_v47  ;;  %v16_v31 = vld [vmem:[%s1228_s0 + $0x8] sm:$0xff] }
  0x24   :  { %731 = vmatprep.subr.bf16.mxu1 %v730_v52  ;;  %261 = vmatmul.mubr.f32.vlgmr.msra.gmra.mrb[0].mxu0 %v161_v27  ;;  %v105_v27 = vld [vmem:[%s1229_s1 + $0x2c0] sm:$0xff] }
  0x25   :  { %701 = vmatpush3.bf16.msra.mxu0 %v700_v58 }
  0x26   :  { %331 = vmatmul.mubr.f32.vlgmr.msra.gmra.mrb[0].mxu1 %v168_v33  ;;  %703 = vmatprep.subr.bf16.mxu0 %v702_v60 }
  0x27   :  { %733 = vmatpush3.bf16.msra.mxu1 %v732_v59 }
  0x28   :  { %735 = vmatprep.subr.bf16.mxu1 %v734_v0 }
  0x29   :  { %705 = vmatpush3.bf16.msra.mxu0 %v704_v6 }
  0x2a   :  { %707 = vmatprep.subr.bf16.mxu0 %v706_v8 }
  0x2b   :  { %737 = vmatpush3.bf16.msra.mxu1 %v736_v7 }
  0x2c   :  { %739 = vmatprep.subr.bf16.mxu1 %v738_v12 }
  0x2d   :  { %8 = vsyncpa [#allocation3], 0  ;;  %709 = vmatpush3.bf16.msra.mxu0 %v708_v19  ;;  %v712_v32 = vpack.c.bf16 %v88_v23, %v87_v20  ;;  %v1123_v33 = vrot.slane %v16_v31, %v962_v13  ;;  %v171_v34 = vcombine.high %v16_v31, %v16_v31  ;;  %v744_v35 = vpack.c.bf16 %v120_v25, %v119_v24  ;;  %v89_v37 = vld [vmem:[%s1229_s1 + $0x240] sm:$0xff]  ;;  %v90_v38 = vld [vmem:[%s1229_s1 + $0x248] sm:$0xff] }
  0x2e   :  { %711 = vmatprep.subr.bf16.mxu0 %v710_v22  ;;  %v714_v36 = vpack.c.bf16 %v106_v28, %v105_v27  ;;  %v121_v39 = vld [vmem:[%s1229_s1 + $0x340] sm:$0xff]  ;;  %v746_v40 = vpack.c.bf16 %v138_v30, %v137_v29  ;;  %v122_v41 = vld [vmem:[%s1229_s1 + $0x348] sm:$0xff]  ;;  %v107_v42 = vld [vmem:[%s1229_s1 + $0x2d0] sm:$0xff]  ;;  %v716_v48 = vpack.c.bf16 %v90_v38, %v89_v37  ;;  %vm477_vm0 = vcmask 254976  }
  0x2f   :  { %741 = vmatpush3.bf16.msra.mxu1 %v740_v21  ;;  %v108_v43 = vld [vmem:[%s1229_s1 + $0x2d8] sm:$0xff]  ;;  %v186_v44 = vcombine.high %v1123_v33, %v1123_v33  ;;  %v185_v45 = vrot.slane %v171_v34, %v962_v13  ;;  %v139_v46 = vld [vmem:[%s1229_s1 + $0x3d0] sm:$0xff]  ;;  %v748_v50 = vpack.c.bf16 %v122_v41, %v121_v39  ;;  %v109_v56 = vld [vmem:[%s1229_s1 + $0x2e0] sm:$0xff] }
  0x30   :  { %743 = vmatprep.subr.bf16.mxu1 %v742_v26  ;;  %v140_v47 = vld [vmem:[%s1229_s1 + $0x3d8] sm:$0xff]  ;;  %v718_v51 = vpack.c.bf16 %v108_v43, %v107_v42  ;;  %v91_v13 = vld [vmem:[%s1229_s1 + $0x250] sm:$0xff]  ;;  %v110_v57 = vld [vmem:[%s1229_s1 + $0x2e8] sm:$0xff] }
  0x31   :  { %713 = vmatpush3.bf16.msra.mxu0 %v712_v32  ;;  %400 = vmatprep.mubr.f32.mxu0 %v186_v44  ;;  %v187_v49 = vcombine.high %v185_v45, %v185_v45  ;;  %v92_v52 = vld [vmem:[%s1229_s1 + $0x258] sm:$0xff]  ;;  %v123_v53 = vld [vmem:[%s1229_s1 + $0x350] sm:$0xff]  ;;  %v750_v54 = vpack.c.bf16 %v140_v47, %v139_v46  ;;  %v141_v58 = vld [vmem:[%s1229_s1 + $0x3e0] sm:$0xff]  ;;  %v722_v62 = vpack.c.bf16 %v110_v57, %v109_v56 }
  0x32   :  { %715 = vmatprep.subr.bf16.mxu0 %v714_v36  ;;  %v124_v55 = vld [vmem:[%s1229_s1 + $0x358] sm:$0xff]  ;;  %v142_v59 = vld [vmem:[%s1229_s1 + $0x3e8] sm:$0xff]  ;;  %v720_v60 = vpack.c.bf16 %v92_v52, %v91_v13  ;;  %v93_v63 = vld [vmem:[%s1229_s1 + $0x260] sm:$0xff] }
  0x33   :  { %745 = vmatpush3.bf16.msra.mxu1 %v744_v35  ;;  %470 = vmatprep.mubr.f32.mxu1 %v187_v49  ;;  %v752_v61 = vpack.c.bf16 %v124_v55, %v123_v53  ;;  %v94_v0 = vld [vmem:[%s1229_s1 + $0x268] sm:$0xff]  ;;  %v125_v1 = vld [vmem:[%s1229_s1 + $0x360] sm:$0xff]  ;;  %v754_v2 = vpack.c.bf16 %v142_v59, %v141_v58  ;;  %v111_v4 = vld [vmem:[%s1229_s1 + $0x2f0] sm:$0xff] }
  0x34   :  { %747 = vmatprep.subr.bf16.mxu1 %v746_v40  ;;  %v126_v3 = vld [vmem:[%s1229_s1 + $0x368] sm:$0xff]  ;;  %v112_v5 = vld [vmem:[%s1229_s1 + $0x2f8] sm:$0xff]  ;;  %v143_v6 = vld [vmem:[%s1229_s1 + $0x3f0] sm:$0xff]  ;;  %v724_v8 = vpack.c.bf16 %v94_v0, %v93_v63 }
  0x35   :  { %717 = vmatpush3.bf16.msra.mxu0 %v716_v48  ;;  %v144_v7 = vld [vmem:[%s1229_s1 + $0x3f8] sm:$0xff]  ;;  %v756_v9 = vpack.c.bf16 %v126_v3, %v125_v1  ;;  %v726_v10 = vpack.c.bf16 %v112_v5, %v111_v4  ;;  %v95_v11 = vld [vmem:[%s1229_s1 + $0x270] sm:$0xff]  ;;  %v493_v20 = vld [vmem:[%s1230_s2] ss:$0 sm:$0xff] }
  0x36   :  { %719 = vmatprep.subr.bf16.mxu0 %v718_v51  ;;  %v96_v12 = vld [vmem:[%s1229_s1 + $0x278] sm:$0xff]  ;;  %v758_v14 = vpack.c.bf16 %v144_v7, %v143_v6  ;;  %v127_v15 = vld [vmem:[%s1229_s1 + $0x370] sm:$0xff] }
  0x37   :  { %749 = vmatpush3.bf16.msra.mxu1 %v748_v50  ;;  %v128_v16 = vld [vmem:[%s1229_s1 + $0x378] sm:$0xff]  ;;  %v728_v17 = vpack.c.bf16 %v96_v12, %v95_v11  ;;  %s791_s1 = smov [#allocation2]  }
  0x38   :  { %751 = vmatprep.subr.bf16.mxu1 %v750_v54  ;;  %v760_v18 = vpack.c.bf16 %v128_v16, %v127_v15  ;;  %s485_s29 = sshll.u32 %s791_s1, 4  ;;  %s486_s29 = int_to_ptr.vmem [resolvable:$true] %s485_s29 }
  0x39   :  { %721 = vmatpush3.bf16.msra.mxu0 %v720_v60  ;;  %s766_s2 = scalar_lea.vmem %s486_s29, 32  ;;  %p771_p1 = scmp.lt.s32.totalorder %s486_s29, %s486_s29 }
  0x3a   :  { %723 = vmatprep.subr.bf16.mxu0 %v722_v62  ;;  %p767_p0 = scmp.ne.s32.totalorder %s486_s29, %s766_s2  ;;  %p772_p2 = scmp.lt.s32.totalorder %s766_s2, %s766_s2 }
  0x3b   :  { %753 = vmatpush3.bf16.msra.mxu1 %v752_v61 }
  0x3c   :  { %755 = vmatprep.subr.bf16.mxu1 %v754_v2  ;;  %p773_p3 = por %p772_p2, %p771_p1 }
  0x3d   :  { %725 = vmatpush3.bf16.msra.mxu0 %v724_v8 }
  0x3e   :  { %727 = vmatprep.subr.bf16.mxu0 %v726_v10  ;;  %p774_p4 = pnand %p773_p3, %p767_p0 }
  0x3f   :  { %757 = vmatpush3.bf16.msra.mxu1 %v756_v9 }
  0x40   :  { %759 = vmatprep.subr.bf16.mxu1 %v758_v14 }
  0x41   :  { %729 = vmatpush3.bf16.msra.mxu0 %v728_v17 }
  0x43   :  { %761 = vmatpush3.bf16.msra.mxu1 %v760_v18 }
  0x44   :  { %401 = vmatmul.mubr.f32.vlgmr.msra.gmra.mrb[2].mxu0 %v1123_v33 }
  0x46   :  { %471 = vmatmul.mubr.f32.vlgmr.msra.gmra.mrb[2].mxu1 %v185_v45 }
  0xf7   :  { %v526_v19 = vpop.f32.mrb[0].mxu0 }
  0xf8   :  { %v527_v21 = vpop.f32.mrb[1].mxu0 }
  0xf9   :  { %v561_v22 = vpop.f32.mrb[0].mxu1  ;;  %v528_v23 = vadd.f32 %v527_v21, %v526_v19 }
  0xfa   :  { %v562_v24 = vpop.f32.mrb[1].mxu1 }
  0xfb   :  { %v563_v25 = vadd.f32 %v562_v24, %v561_v22  ;;  %v263_v26 = vadd.f32 %v528_v23, %v493_v20 }
  0xfd   :  { %v333_v27 = vadd.f32 %v563_v25, %v263_v26 }
 0x117   :  { %v596_v28 = vpop.f32.mrb[2].mxu0 }
 0x118   :  { %v597_v29 = vpop.f32.mrb[3].mxu0 }
 0x119   :  { %v631_v30 = vpop.f32.mrb[2].mxu1  ;;  %v598_v31 = vadd.f32 %v597_v29, %v596_v28 }
 0x11a   :  { %v632_v32 = vpop.f32.mrb[3].mxu1 }
 0x11b   :  { %v633_v34 = vadd.f32 %v632_v32, %v631_v30  ;;  %v403_v33 = vadd.f32 %v598_v31, %v333_v27 }
 0x11d   :  { %v473_v35 = vadd.f32 %v633_v34, %v403_v33 }
 0x11f   :  { %v476_v36 = vmax.f32 %v473_v35, 0.0 }
 0x121   :  { %478 = vst.msk [vmem:[#allocation2] sm:$0x3] %vm477_vm0, %v476_v36 }
 0x122   :  { %777 = shalt.err (!%p774_p4)
}
 0x123   :  { %s778_s4 = scalar_lea.hbm %s1231_s3, 32 }
 0x124   :  { %p779_p5 = scmp.ne.s32.totalorder %s1231_s3, %s778_s4  ;;  %p782_p6 = scmp.lt.u32.totalorder %s778_s4, %s1231_s3 }
 0x126   :  { %p784_p7 = pnand %p782_p6, %p779_p5 }
 0x128   :  { %787 = shalt.err (!%p784_p7)
}
 0x129   :  { %488 = dma.vmem_to_hbm [thread:$0]  %s486_s29, 32, %s1231_s3, [#allocation3]  }
 0x12a   :  { %788 = dma.done.wait [#allocation3], 32  }
 0x12b   :  { %789 = vsyncadd [#allocation3], 4294967264 }
 0x12c   :  { %492 = vsyncpa [#allocation3], 1 }

</bundles_post_ra>
